<compile_context>
chip_gen: v6e
topology: v6e:2x2x1
jax: 0.10.0
libtpu: 0.0.40
codegen_flags: <defaults>
</compile_context>

<pallas_src>
import functools
import math

import jax
import jax.numpy as jnp
from jax.experimental import pallas as pl
from jax.experimental.pallas import tpu as pltpu


def _round_up(n, m):
    return ((n + m - 1) // m) * m


def _autoenc_kernel(bits_ref, x_ref,
                    w1_ref, b1_ref, w2_ref, b2_ref, w3_ref, b3_ref,
                    w4_ref, b4_ref, w5_ref, b5_ref, w6_ref, b6_ref,
                    out_ref, *, p_drop, train):
    x = x_ref[...].astype(jnp.float32)

    if train:
        # nn.Dropout(p=0.2) in training mode: zero with prob p, scale kept
        # elements by 1/(1-p).  Keep decision is done entirely with integers:
        # top 24 bits of the uniform uint32 vs. an int threshold.
        thresh24 = jnp.int32(int(round(p_drop * float(1 << 24))))
        r24 = (bits_ref[...] >> jnp.uint32(8)).astype(jnp.int32)
        keep = r24 >= thresh24
        x = jnp.where(keep, x * (1.0 / (1.0 - p_drop)), 0.0)

    def lin(h, w_ref, b_ref):
        return jnp.dot(h, w_ref[...],
                       preferred_element_type=jnp.float32) + b_ref[...]

    # encoder: dim -> 0.7*dim -> 0.5*dim -> 0.2*dim
    h = jnp.tanh(lin(x, w1_ref, b1_ref))
    h = jnp.tanh(lin(h, w2_ref, b2_ref))
    z = lin(h, w3_ref, b3_ref)
    # decoder: 0.2*dim -> 0.5*dim -> 0.7*dim -> dim
    h = jnp.tanh(lin(z, w4_ref, b4_ref))
    h = jnp.tanh(lin(h, w5_ref, b5_ref))
    out_ref[...] = lin(h, w6_ref, b6_ref).astype(out_ref.dtype)


def init_autoencoder_params(dim, key):
    """Deterministic PyTorch-style init: U(-1/sqrt(fan_in), 1/sqrt(fan_in))."""
    d7, d5, d2 = int(dim * 0.7), int(dim * 0.5), int(dim * 0.2)
    sizes = [(dim, d7), (d7, d5), (d5, d2),    # encoder
             (d2, d5), (d5, d7), (d7, dim)]    # decoder
    params = {"dim": dim, "layer_sizes": sizes}
    for i, (fan_in, fan_out) in enumerate(sizes, start=1):
        key, kw, kb = jax.random.split(key, 3)
        bound = 1.0 / math.sqrt(float(fan_in))
        # stored as (in, out)  (== PyTorch weight (out, in) transposed)
        params[f"w{i}"] = jax.random.uniform(
            kw, (fan_in, fan_out), jnp.float32, -bound, bound)
        params[f"b{i}"] = jax.random.uniform(
            kb, (fan_out,), jnp.float32, -bound, bound)
    return params


def _pad_params(params):
    """Zero-pad every weight/bias to 128-lane multiples (lane-dense layout)."""
    flat = []
    for i, (fi, fo) in enumerate(params["layer_sizes"], start=1):
        fi_p, fo_p = _round_up(fi, 128), _round_up(fo, 128)
        w = jnp.zeros((fi_p, fo_p), jnp.float32).at[:fi, :fo].set(
            params[f"w{i}"])
        b = jnp.zeros((1, fo_p), jnp.float32).at[0, :fo].set(params[f"b{i}"])
        flat.extend([w, b])
    return flat


def autoencoder_forward(x, params, *, key=None, train=True, p_drop=0.2,
                        tile_b=512):
    dim = params["dim"]
    x2 = x.reshape(-1, dim).astype(jnp.float32)     # x.view(-1, self.dim)
    batch = x2.shape[0]
    dim_pad = _round_up(dim, 128)

    # batch tile: >=512 rows amortizes per-step overhead; small batches round
    # up to a sublane multiple.  Sweep per generation for production use.
    tb = min(tile_b, _round_up(batch, 8))
    batch_pad = _round_up(batch, tb)
    grid = (batch_pad // tb,)

    x_p = jnp.zeros((batch_pad, dim_pad), jnp.float32).at[:batch, :dim].set(x2)

    # Dropout bits from the host-side JAX PRNG (works on hardware and under
    # interpret mode; each batch tile automatically gets independent bits).
    # TODO(synk): switch to on-chip pltpu.prng_random_bits (seeded per grid
    # step) when interpret-mode support is not required, to avoid streaming
    # the bits from HBM.
    if train:
        if key is None:
            key = jax.random.PRNGKey(0)
        bits = jax.random.bits(key, (batch_pad, dim_pad), dtype=jnp.uint32)
    else:
        bits = jnp.zeros((batch_pad, dim_pad), jnp.uint32)

    flat_params = _pad_params(params)

    in_specs = [
        pl.BlockSpec((tb, dim_pad), lambda i: (i, 0)),   # dropout bits
        pl.BlockSpec((tb, dim_pad), lambda i: (i, 0)),   # x
    ]
    for p in flat_params:
        # weights / biases: constant index_map -> VMEM-resident across steps
        in_specs.append(pl.BlockSpec(p.shape, lambda i: (0, 0)))

    out = pl.pallas_call(
        functools.partial(_autoenc_kernel, p_drop=p_drop, train=train),
        out_shape=jax.ShapeDtypeStruct((batch_pad, dim_pad), jnp.float32),
        grid_spec=pltpu.PrefetchScalarGridSpec(
            num_scalar_prefetch=0,
            grid=grid,
            in_specs=in_specs,
            out_specs=pl.BlockSpec((tb, dim_pad), lambda i: (i, 0)),
        ),
        compiler_params=pltpu.CompilerParams(
            dimension_semantics=("parallel",)),
    )(bits, x_p, *flat_params)

    # slice padded lanes/rows away, then out.view(-1, self.dim)
    return out[:batch, :dim].reshape(-1, dim)


def _reference_forward_eval(x, params):
    """Pure-JAX reference (dropout disabled) for a sanity check."""
    dim = params["dim"]
    h = x.reshape(-1, dim).astype(jnp.float32)
    h = jnp.tanh(h @ params["w1"] + params["b1"])
    h = jnp.tanh(h @ params["w2"] + params["b2"])
    z = h @ params["w3"] + params["b3"]
    h = jnp.tanh(z @ params["w4"] + params["b4"])
    h = jnp.tanh(h @ params["w5"] + params["b5"])
    return (h @ params["w6"] + params["b6"]).reshape(-1, dim)


if __name__ == "__main__":
    dim = 40                      # -> hidden sizes 28, 20, 8
    key = jax.random.PRNGKey(0)
    key, kx, kdrop = jax.random.split(key, 3)
    params = init_autoencoder_params(dim, key)

    # arbitrary leading shape; forward flattens to (-1, dim) -> (8, 40)
    x = jax.random.normal(kx, (2, 4, dim), dtype=jnp.float32)

    # training-mode forward (dropout active)
    out_train = autoencoder_forward(x, params, key=kdrop, train=True)
    out_train = jax.block_until_ready(out_train)
    assert out_train.shape == (8, dim)
    assert bool(jnp.all(jnp.isfinite(out_train)))

    # eval-mode forward (dropout = identity) checked against pure-JAX reference
    out_eval = jax.block_until_ready(
        autoencoder_forward(x, params, train=False))
    ref = _reference_forward_eval(x, params)
    assert jnp.allclose(out_eval, ref, atol=1e-5, rtol=1e-5), \
        "mismatch vs reference"

    print("KERNEL_OK")
</pallas_src>

<mosaic_0001>
module attributes {stable_mosaic.version = 11 : i64} {
  func.func @_autoenc_kernel(%arg0: i32, %arg1: memref<8x128xi32, #tpu.memory_space<vmem>>, %arg2: memref<8x128xf32, #tpu.memory_space<vmem>>, %arg3: memref<128x128xf32, #tpu.memory_space<vmem>>, %arg4: memref<1x128xf32, #tpu.memory_space<vmem>>, %arg5: memref<128x128xf32, #tpu.memory_space<vmem>>, %arg6: memref<1x128xf32, #tpu.memory_space<vmem>>, %arg7: memref<128x128xf32, #tpu.memory_space<vmem>>, %arg8: memref<1x128xf32, #tpu.memory_space<vmem>>, %arg9: memref<128x128xf32, #tpu.memory_space<vmem>>, %arg10: memref<1x128xf32, #tpu.memory_space<vmem>>, %arg11: memref<128x128xf32, #tpu.memory_space<vmem>>, %arg12: memref<1x128xf32, #tpu.memory_space<vmem>>, %arg13: memref<128x128xf32, #tpu.memory_space<vmem>>, %arg14: memref<1x128xf32, #tpu.memory_space<vmem>>, %arg15: memref<8x128xf32, #tpu.memory_space<vmem>>) attributes {dimension_semantics = [#tpu.dimension_semantics<parallel>], iteration_bounds = array<i64: 1>, scalar_prefetch = 0 : i64, scratch_operands = 0 : i64, tpu.core_type = #tpu.core_type<tc>, window_params = [{transform_indices = @transform_0, window_bounds = array<i64: 8, 128>}, {transform_indices = @transform_1, window_bounds = array<i64: 8, 128>}, {pipeline_mode = #tpu.pipeline_mode<synchronous>, transform_indices = @transform_2, window_bounds = array<i64: 128, 128>}, {pipeline_mode = #tpu.pipeline_mode<synchronous>, transform_indices = @transform_3, window_bounds = array<i64: 1, 128>}, {pipeline_mode = #tpu.pipeline_mode<synchronous>, transform_indices = @transform_4, window_bounds = array<i64: 128, 128>}, {pipeline_mode = #tpu.pipeline_mode<synchronous>, transform_indices = @transform_5, window_bounds = array<i64: 1, 128>}, {pipeline_mode = #tpu.pipeline_mode<synchronous>, transform_indices = @transform_6, window_bounds = array<i64: 128, 128>}, {pipeline_mode = #tpu.pipeline_mode<synchronous>, transform_indices = @transform_7, window_bounds = array<i64: 1, 128>}, {pipeline_mode = #tpu.pipeline_mode<synchronous>, transform_indices = @transform_8, window_bounds = array<i64: 128, 128>}, {pipeline_mode = #tpu.pipeline_mode<synchronous>, transform_indices = @transform_9, window_bounds = array<i64: 1, 128>}, {pipeline_mode = #tpu.pipeline_mode<synchronous>, transform_indices = @transform_10, window_bounds = array<i64: 128, 128>}, {pipeline_mode = #tpu.pipeline_mode<synchronous>, transform_indices = @transform_11, window_bounds = array<i64: 1, 128>}, {pipeline_mode = #tpu.pipeline_mode<synchronous>, transform_indices = @transform_12, window_bounds = array<i64: 128, 128>}, {pipeline_mode = #tpu.pipeline_mode<synchronous>, transform_indices = @transform_13, window_bounds = array<i64: 1, 128>}, {transform_indices = @transform_14, window_bounds = array<i64: 8, 128>}]} {
    %c0 = arith.constant 0 : index
    %c0_0 = arith.constant 0 : index
    %0 = vector.load %arg2[%c0, %c0_0] : memref<8x128xf32, #tpu.memory_space<vmem>>, vector<8x128xf32>
    %c0_1 = arith.constant 0 : index
    %c0_2 = arith.constant 0 : index
    %1 = vector.load %arg1[%c0_1, %c0_2] : memref<8x128xi32, #tpu.memory_space<vmem>>, vector<8x128xi32>
    %c8_i32 = arith.constant 8 : i32
    %2 = vector.broadcast %c8_i32 : i32 to vector<8x128xi32>
    %3 = arith.shrui %1, %2 : vector<8x128xi32>
    %c3355443_i32 = arith.constant 3355443 : i32
    %4 = vector.broadcast %c3355443_i32 : i32 to vector<8x128xi32>
    %5 = arith.cmpi sge, %3, %4 : vector<8x128xi32>
    %cst = arith.constant 1.250000e+00 : f32
    %6 = vector.broadcast %cst : f32 to vector<8x128xf32>
    %7 = arith.mulf %0, %6 : vector<8x128xf32>
    %cst_3 = arith.constant 0.000000e+00 : f32
    %8 = vector.broadcast %cst_3 : f32 to vector<8x128xf32>
    %9 = arith.select %5, %7, %8 : vector<8x128xi1>, vector<8x128xf32>
    %c0_4 = arith.constant 0 : index
    %c0_5 = arith.constant 0 : index
    %10 = vector.load %arg3[%c0_4, %c0_5] : memref<128x128xf32, #tpu.memory_space<vmem>>, vector<128x128xf32>
    %cst_6 = arith.constant dense<0.000000e+00> : vector<8x128xf32>
    %11 = tpu.matmul %9, %10, %cst_6 {dimension_numbers = #tpu.dot_dimension_numbers<[1], [0], [0], [1], [0, 0, 1, 1], [], []>} : vector<8x128xf32>, vector<128x128xf32>, vector<8x128xf32> -> vector<8x128xf32>
    %c0_7 = arith.constant 0 : index
    %c0_8 = arith.constant 0 : index
    %12 = vector.load %arg4[%c0_7, %c0_8] : memref<1x128xf32, #tpu.memory_space<vmem>>, vector<1x128xf32>
    %13 = vector.broadcast %12 : vector<1x128xf32> to vector<8x128xf32>
    %14 = arith.addf %11, %13 : vector<8x128xf32>
    %15 = math.tanh %14 : vector<8x128xf32>
    %c0_9 = arith.constant 0 : index
    %c0_10 = arith.constant 0 : index
    %16 = vector.load %arg5[%c0_9, %c0_10] : memref<128x128xf32, #tpu.memory_space<vmem>>, vector<128x128xf32>
    %cst_11 = arith.constant dense<0.000000e+00> : vector<8x128xf32>
    %17 = tpu.matmul %15, %16, %cst_11 {dimension_numbers = #tpu.dot_dimension_numbers<[1], [0], [0], [1], [0, 0, 1, 1], [], []>} : vector<8x128xf32>, vector<128x128xf32>, vector<8x128xf32> -> vector<8x128xf32>
    %c0_12 = arith.constant 0 : index
    %c0_13 = arith.constant 0 : index
    %18 = vector.load %arg6[%c0_12, %c0_13] : memref<1x128xf32, #tpu.memory_space<vmem>>, vector<1x128xf32>
    %19 = vector.broadcast %18 : vector<1x128xf32> to vector<8x128xf32>
    %20 = arith.addf %17, %19 : vector<8x128xf32>
    %21 = math.tanh %20 : vector<8x128xf32>
    %c0_14 = arith.constant 0 : index
    %c0_15 = arith.constant 0 : index
    %22 = vector.load %arg7[%c0_14, %c0_15] : memref<128x128xf32, #tpu.memory_space<vmem>>, vector<128x128xf32>
    %cst_16 = arith.constant dense<0.000000e+00> : vector<8x128xf32>
    %23 = tpu.matmul %21, %22, %cst_16 {dimension_numbers = #tpu.dot_dimension_numbers<[1], [0], [0], [1], [0, 0, 1, 1], [], []>} : vector<8x128xf32>, vector<128x128xf32>, vector<8x128xf32> -> vector<8x128xf32>
    %c0_17 = arith.constant 0 : index
    %c0_18 = arith.constant 0 : index
    %24 = vector.load %arg8[%c0_17, %c0_18] : memref<1x128xf32, #tpu.memory_space<vmem>>, vector<1x128xf32>
    %25 = vector.broadcast %24 : vector<1x128xf32> to vector<8x128xf32>
    %26 = arith.addf %23, %25 : vector<8x128xf32>
    %c0_19 = arith.constant 0 : index
    %c0_20 = arith.constant 0 : index
    %27 = vector.load %arg9[%c0_19, %c0_20] : memref<128x128xf32, #tpu.memory_space<vmem>>, vector<128x128xf32>
    %cst_21 = arith.constant dense<0.000000e+00> : vector<8x128xf32>
    %28 = tpu.matmul %26, %27, %cst_21 {dimension_numbers = #tpu.dot_dimension_numbers<[1], [0], [0], [1], [0, 0, 1, 1], [], []>} : vector<8x128xf32>, vector<128x128xf32>, vector<8x128xf32> -> vector<8x128xf32>
    %c0_22 = arith.constant 0 : index
    %c0_23 = arith.constant 0 : index
    %29 = vector.load %arg10[%c0_22, %c0_23] : memref<1x128xf32, #tpu.memory_space<vmem>>, vector<1x128xf32>
    %30 = vector.broadcast %29 : vector<1x128xf32> to vector<8x128xf32>
    %31 = arith.addf %28, %30 : vector<8x128xf32>
    %32 = math.tanh %31 : vector<8x128xf32>
    %c0_24 = arith.constant 0 : index
    %c0_25 = arith.constant 0 : index
    %33 = vector.load %arg11[%c0_24, %c0_25] : memref<128x128xf32, #tpu.memory_space<vmem>>, vector<128x128xf32>
    %cst_26 = arith.constant dense<0.000000e+00> : vector<8x128xf32>
    %34 = tpu.matmul %32, %33, %cst_26 {dimension_numbers = #tpu.dot_dimension_numbers<[1], [0], [0], [1], [0, 0, 1, 1], [], []>} : vector<8x128xf32>, vector<128x128xf32>, vector<8x128xf32> -> vector<8x128xf32>
    %c0_27 = arith.constant 0 : index
    %c0_28 = arith.constant 0 : index
    %35 = vector.load %arg12[%c0_27, %c0_28] : memref<1x128xf32, #tpu.memory_space<vmem>>, vector<1x128xf32>
    %36 = vector.broadcast %35 : vector<1x128xf32> to vector<8x128xf32>
    %37 = arith.addf %34, %36 : vector<8x128xf32>
    %38 = math.tanh %37 : vector<8x128xf32>
    %c0_29 = arith.constant 0 : index
    %c0_30 = arith.constant 0 : index
    %39 = vector.load %arg13[%c0_29, %c0_30] : memref<128x128xf32, #tpu.memory_space<vmem>>, vector<128x128xf32>
    %cst_31 = arith.constant dense<0.000000e+00> : vector<8x128xf32>
    %40 = tpu.matmul %38, %39, %cst_31 {dimension_numbers = #tpu.dot_dimension_numbers<[1], [0], [0], [1], [0, 0, 1, 1], [], []>} : vector<8x128xf32>, vector<128x128xf32>, vector<8x128xf32> -> vector<8x128xf32>
    %c0_32 = arith.constant 0 : index
    %c0_33 = arith.constant 0 : index
    %41 = vector.load %arg14[%c0_32, %c0_33] : memref<1x128xf32, #tpu.memory_space<vmem>>, vector<1x128xf32>
    %42 = vector.broadcast %41 : vector<1x128xf32> to vector<8x128xf32>
    %43 = arith.addf %40, %42 : vector<8x128xf32>
    %c0_34 = arith.constant 0 : index
    %c0_35 = arith.constant 0 : index
    %44 = vector.load %arg15[%c0_34, %c0_35] : memref<8x128xf32, #tpu.memory_space<vmem>>, vector<8x128xf32>
    tpu.vector_store %arg15[%c0_34, %c0_35], %43 {strides = array<i32>} : memref<8x128xf32, #tpu.memory_space<vmem>>, vector<8x128xf32>,
    return
  }
  func.func @transform_0(%arg0: i32) -> (i32, i32) {
    %c0_i32 = arith.constant 0 : i32
    %c0_i32_0 = arith.constant 0 : i32
    return %arg0, %c0_i32 : i32, i32
  }
  func.func @transform_1(%arg0: i32) -> (i32, i32) {
    %c0_i32 = arith.constant 0 : i32
    %c0_i32_0 = arith.constant 0 : i32
    return %arg0, %c0_i32 : i32, i32
  }
  func.func @transform_2(%arg0: i32) -> (i32, i32) {
    %c0_i32 = arith.constant 0 : i32
    %c0_i32_0 = arith.constant 0 : i32
    %c0_i32_1 = arith.constant 0 : i32
    return %c0_i32, %c0_i32_0 : i32, i32
  }
  func.func @transform_3(%arg0: i32) -> (i32, i32) {
    %c0_i32 = arith.constant 0 : i32
    %c0_i32_0 = arith.constant 0 : i32
    %c0_i32_1 = arith.constant 0 : i32
    return %c0_i32, %c0_i32_0 : i32, i32
  }
  func.func @transform_4(%arg0: i32) -> (i32, i32) {
    %c0_i32 = arith.constant 0 : i32
    %c0_i32_0 = arith.constant 0 : i32
    %c0_i32_1 = arith.constant 0 : i32
    return %c0_i32, %c0_i32_0 : i32, i32
  }
  func.func @transform_5(%arg0: i32) -> (i32, i32) {
    %c0_i32 = arith.constant 0 : i32
    %c0_i32_0 = arith.constant 0 : i32
    %c0_i32_1 = arith.constant 0 : i32
    return %c0_i32, %c0_i32_0 : i32, i32
  }
  func.func @transform_6(%arg0: i32) -> (i32, i32) {
    %c0_i32 = arith.constant 0 : i32
    %c0_i32_0 = arith.constant 0 : i32
    %c0_i32_1 = arith.constant 0 : i32
    return %c0_i32, %c0_i32_0 : i32, i32
  }
  func.func @transform_7(%arg0: i32) -> (i32, i32) {
    %c0_i32 = arith.constant 0 : i32
    %c0_i32_0 = arith.constant 0 : i32
    %c0_i32_1 = arith.constant 0 : i32
    return %c0_i32, %c0_i32_0 : i32, i32
  }
  func.func @transform_8(%arg0: i32) -> (i32, i32) {
    %c0_i32 = arith.constant 0 : i32
    %c0_i32_0 = arith.constant 0 : i32
    %c0_i32_1 = arith.constant 0 : i32
    return %c0_i32, %c0_i32_0 : i32, i32
  }
  func.func @transform_9(%arg0: i32) -> (i32, i32) {
    %c0_i32 = arith.constant 0 : i32
    %c0_i32_0 = arith.constant 0 : i32
    %c0_i32_1 = arith.constant 0 : i32
    return %c0_i32, %c0_i32_0 : i32, i32
  }
  func.func @transform_10(%arg0: i32) -> (i32, i32) {
    %c0_i32 = arith.constant 0 : i32
    %c0_i32_0 = arith.constant 0 : i32
    %c0_i32_1 = arith.constant 0 : i32
    return %c0_i32, %c0_i32_0 : i32, i32
  }
  func.func @transform_11(%arg0: i32) -> (i32, i32) {
    %c0_i32 = arith.constant 0 : i32
    %c0_i32_0 = arith.constant 0 : i32
    %c0_i32_1 = arith.constant 0 : i32
    return %c0_i32, %c0_i32_0 : i32, i32
  }
  func.func @transform_12(%arg0: i32) -> (i32, i32) {
    %c0_i32 = arith.constant 0 : i32
    %c0_i32_0 = arith.constant 0 : i32
    %c0_i32_1 = arith.constant 0 : i32
    return %c0_i32, %c0_i32_0 : i32, i32
  }
  func.func @transform_13(%arg0: i32) -> (i32, i32) {
    %c0_i32 = arith.constant 0 : i32
    %c0_i32_0 = arith.constant 0 : i32
    %c0_i32_1 = arith.constant 0 : i32
    return %c0_i32, %c0_i32_0 : i32, i32
  }
  func.func @transform_14(%arg0: i32) -> (i32, i32) {
    %c0_i32 = arith.constant 0 : i32
    %c0_i32_0 = arith.constant 0 : i32
    return %arg0, %c0_i32 : i32, i32
  }
}

</mosaic_0001>

<bundles_post_ra>
// kernel: tpu_custom_call.1
= control target key start
LH: loop header
LB: loop body
LE: loop exit
PB: predicated region body
PF: predicated region fallthrough
CT: control target
= control target key end

     0   :  { %19 = vsyncpa [#allocation3], 0  ;;  %s1532_s0 = inlined_call_operand.hbm [shape: u32[8,128], index: 0, kind: input, shape index: {}]   ;;  %s1533_s1 = inlined_call_operand.hbm [shape: f32[8,128], index: 1, kind: input, shape index: {}]   ;;  %s1534_s2 = inlined_call_operand.hbm [shape: f32[128,128], index: 2, kind: input, shape index: {}]   ;;  %s1535_s3 = inlined_call_operand.vmem [shape: f32[1,128], index: 3, kind: input, shape index: {}]   ;;  %s1536_s4 = inlined_call_operand.hbm [shape: f32[128,128], index: 4, kind: input, shape index: {}]   ;;  %s1537_s5 = inlined_call_operand.vmem [shape: f32[1,128], index: 5, kind: input, shape index: {}]   ;;  %s1538_s6 = inlined_call_operand.hbm [shape: f32[128,128], index: 6, kind: input, shape index: {}]   ;;  %s1539_s7 = inlined_call_operand.vmem [shape: f32[1,128], index: 7, kind: input, shape index: {}]   ;;  %s1540_s8 = inlined_call_operand.hbm [shape: f32[128,128], index: 8, kind: input, shape index: {}]   ;;  %s1541_s9 = inlined_call_operand.vmem [shape: f32[1,128], index: 9, kind: input, shape index: {}]   ;;  %s1542_s10 = inlined_call_operand.hbm [shape: f32[128,128], index: 10, kind: input, shape index: {}]   ;;  %s1543_s11 = inlined_call_operand.vmem [shape: f32[1,128], index: 11, kind: input, shape index: {}]   ;;  %s1544_s12 = inlined_call_operand.hbm [shape: f32[128,128], index: 12, kind: input, shape index: {}]   ;;  %s1545_s13 = inlined_call_operand.vmem [shape: f32[1,128], index: 13, kind: input, shape index: {}]   ;;  %s1546_s14 = inlined_call_operand.hbm [shape: f32[8,128], index: 14, kind: output, shape index: {}]  }
   0x1   :  { %20 = vsyncpa [#allocation6], 0 }
   0x2   :  { %21 = vsyncpa [#allocation9], 0 }
   0x3   :  { %22 = vsyncpa [#allocation12], 0 }
   0x4   :  { %23 = vsyncpa [#allocation15], 0 }
   0x5   :  { %24 = vsyncpa [#allocation4], 0  ;;  %s1273_s29 = smov [#allocation5]  }
   0x6   :  { %s41_s30 = sshll.u32 %s1273_s29, 4  ;;  %s42_s30 = int_to_ptr.vmem [resolvable:$true] %s41_s30 }
   0x7   :  { %s1089_s15 = scalar_lea.vmem %s42_s30, 128  ;;  %p1094_p1 = scmp.lt.s32.totalorder %s42_s30, %s42_s30 }
   0x8   :  { %p1090_p0 = scmp.ne.s32.totalorder %s42_s30, %s1089_s15  ;;  %p1095_p2 = scmp.lt.s32.totalorder %s1089_s15, %s1089_s15 }
   0xa   :  { %p1096_p3 = por %p1095_p2, %p1094_p1 }
   0xc   :  { %p1097_p4 = pnand %p1096_p3, %p1090_p0 }
   0xe   :  { %1100 = shalt.err (!%p1097_p4)
}
   0xf   :  { %44 = dma.hbm_to_vmem [thread:$0]  %s1533_s1, 128, %s42_s30, [#allocation6]  }
  0x10   :  { %s1274_s18 = smov [#allocation8]   ;;  %s1275_s20 = smov [#allocation11]  }
  0x11   :  { %s64_s19 = sshll.u32 %s1274_s18, 4  ;;  %s92_s21 = sshll.u32 %s1275_s20, 4  ;;  %s65_s19 = int_to_ptr.vmem [resolvable:$true] %s64_s19  ;;  %s93_s21 = int_to_ptr.vmem [resolvable:$true] %s92_s21 }
  0x12   :  { %s1109_s22 = scalar_lea.vmem %s65_s19, 2048  ;;  %p1114_p6 = scmp.lt.s32.totalorder %s65_s19, %s65_s19 }
  0x13   :  { %p1110_p5 = scmp.ne.s32.totalorder %s65_s19, %s1109_s22  ;;  %p1115_p7 = scmp.lt.s32.totalorder %s1109_s22, %s1109_s22 }
  0x15   :  { %p1116_p8 = por %p1115_p7, %p1114_p6 }
  0x17   :  { %p1117_p9 = pnand %p1116_p8, %p1110_p5 }
  0x19   :  { %1120 = shalt.err (!%p1117_p9)
}
  0x1a   :  { %s1276_s23 = smov 128   ;;  %s1277_s24 = smov 8  }
  0x1b   :  { %70 = dma.hbm_to_vmem [thread:$0]  %s1536_s4, 2048, %s65_s19, [#allocation9], %s1276_s23, %s1276_s23, %s1277_s24  }
  0x1c   :  { %s1129_s1 = scalar_lea.vmem %s93_s21, 2048  ;;  %p1134_p11 = scmp.lt.s32.totalorder %s93_s21, %s93_s21 }
  0x1d   :  { %p1130_p10 = scmp.ne.s32.totalorder %s93_s21, %s1129_s1  ;;  %p1135_p12 = scmp.lt.s32.totalorder %s1129_s1, %s1129_s1 }
  0x1f   :  { %p1136_p13 = por %p1135_p12, %p1134_p11 }
  0x21   :  { %p1137_p0 = pnand %p1136_p13, %p1130_p10 }
  0x23   :  { %1140 = shalt.err (!%p1137_p0)
}
  0x24   :  { %98 = dma.hbm_to_vmem [thread:$0]  %s1540_s8, 2048, %s93_s21, [#allocation12], %s1276_s23, %s1276_s23, %s1277_s24  }
  0x25   :  { %s1278_s29 = smov [#allocation2]   ;;  %s1279_s15 = smov [#allocation7]  }
  0x26   :  { %s31_s30 = sshll.u32 %s1278_s29, 4  ;;  %s50_s4 = sshll.u32 %s1279_s15, 4  ;;  %s32_s30 = int_to_ptr.vmem [resolvable:$true] %s31_s30  ;;  %s51_s4 = int_to_ptr.vmem [resolvable:$true] %s50_s4 }
  0x27   :  { %s1149_s16 = scalar_lea.vmem %s32_s30, 128  ;;  %p1154_p2 = scmp.lt.s32.totalorder %s32_s30, %s32_s30 }
  0x28   :  { %p1150_p1 = scmp.ne.s32.totalorder %s32_s30, %s1149_s16  ;;  %p1155_p3 = scmp.lt.s32.totalorder %s1149_s16, %s1149_s16 }
  0x2a   :  { %p1156_p4 = por %p1155_p3, %p1154_p2 }
  0x2c   :  { %p1157_p5 = pnand %p1156_p4, %p1150_p1 }
  0x2e   :  { %1160 = shalt.err (!%p1157_p5)
}
  0x2f   :  { %34 = dma.hbm_to_vmem [thread:$0]  %s1532_s0, 128, %s32_s30, [#allocation3]  }
  0x30   :  { %s1169_s19 = scalar_lea.vmem %s51_s4, 2048  ;;  %p1174_p7 = scmp.lt.s32.totalorder %s51_s4, %s51_s4 }
  0x31   :  { %p1170_p6 = scmp.ne.s32.totalorder %s51_s4, %s1169_s19  ;;  %p1175_p8 = scmp.lt.s32.totalorder %s1169_s19, %s1169_s19 }
  0x33   :  { %p1176_p9 = por %p1175_p8, %p1174_p7 }
  0x35   :  { %p1177_p10 = pnand %p1176_p9, %p1170_p6 }
  0x37   :  { %1180 = shalt.err (!%p1177_p10)
}
  0x38   :  { %56 = dma.hbm_to_vmem [thread:$0]  %s1534_s2, 2048, %s51_s4, [#allocation6], %s1276_s23, %s1276_s23, %s1277_s24  }
  0x39   :  { %s1280_s21 = smov [#allocation10]   ;;  %s1281_s25 = smov [#allocation13]  }
  0x3a   :  { %s78_s22 = sshll.u32 %s1280_s21, 4  ;;  %s106_s0 = sshll.u32 %s1281_s25, 4  ;;  %s79_s22 = int_to_ptr.vmem [resolvable:$true] %s78_s22  ;;  %s107_s0 = int_to_ptr.vmem [resolvable:$true] %s106_s0 }
  0x3b   :  { %s1189_s26 = scalar_lea.vmem %s79_s22, 2048  ;;  %p1194_p12 = scmp.lt.s32.totalorder %s79_s22, %s79_s22 }
  0x3c   :  { %p1190_p11 = scmp.ne.s32.totalorder %s79_s22, %s1189_s26  ;;  %p1195_p13 = scmp.lt.s32.totalorder %s1189_s26, %s1189_s26 }
  0x3e   :  { %p1196_p0 = por %p1195_p13, %p1194_p12 }
  0x40   :  { %p1197_p1 = pnand %p1196_p0, %p1190_p11 }
  0x42   :  { %1200 = shalt.err (!%p1197_p1)
}
  0x43   :  { %84 = dma.hbm_to_vmem [thread:$0]  %s1538_s6, 2048, %s79_s22, [#allocation9], %s1276_s23, %s1276_s23, %s1277_s24  }
  0x44   :  { %s1209_s2 = scalar_lea.vmem %s107_s0, 2048  ;;  %p1214_p3 = scmp.lt.s32.totalorder %s107_s0, %s107_s0 }
  0x45   :  { %p1210_p2 = scmp.ne.s32.totalorder %s107_s0, %s1209_s2  ;;  %p1215_p4 = scmp.lt.s32.totalorder %s1209_s2, %s1209_s2 }
  0x47   :  { %p1216_p5 = por %p1215_p4, %p1214_p3 }
  0x49   :  { %p1217_p6 = pnand %p1216_p5, %p1210_p2 }
  0x4b   :  { %1220 = shalt.err (!%p1217_p6)
}
  0x4c   :  { %112 = dma.hbm_to_vmem [thread:$0]  %s1542_s10, 2048, %s107_s0, [#allocation12], %s1276_s23, %s1276_s23, %s1277_s24  }
  0x4d   :  { %s1282_s30 = smov [#allocation14]  }
  0x4e   :  { %s120_s15 = sshll.u32 %s1282_s30, 4  ;;  %s121_s15 = int_to_ptr.vmem [resolvable:$true] %s120_s15 }
  0x4f   :  { %s1229_s4 = scalar_lea.vmem %s121_s15, 2048  ;;  %p1234_p8 = scmp.lt.s32.totalorder %s121_s15, %s121_s15 }
  0x50   :  { %p1230_p7 = scmp.ne.s32.totalorder %s121_s15, %s1229_s4  ;;  %p1235_p9 = scmp.lt.s32.totalorder %s1229_s4, %s1229_s4 }
  0x52   :  { %p1236_p10 = por %p1235_p9, %p1234_p8 }
  0x54   :  { %p1237_p11 = pnand %p1236_p10, %p1230_p7 }
  0x56   :  { %1240 = shalt.err (!%p1237_p11)
}
  0x57   :  { %126 = dma.hbm_to_vmem [thread:$0]  %s1544_s12, 2048, %s121_s15, [#allocation15], %s1276_s23, %s1276_s23, %s1277_s24  }
  0x58   :  { %1261 = dma.done.wait [#allocation3], 128  }
  0x59   :  { %1262 = vsyncadd [#allocation3], 4294967168 }
  0x5a   :  { %1263 = dma.done.wait [#allocation6], 2176  }
  0x5b   :  { %1264 = vsyncadd [#allocation6], 4294965120 }
  0x5c   :  { %1265 = dma.done.wait [#allocation9], 4096  }
  0x5d   :  { %1266 = vsyncadd [#allocation9], 4294963200 }
  0x5e   :  { %1267 = dma.done.wait [#allocation12], 4096  }
  0x5f   :  { %1268 = vsyncadd [#allocation12], 4294963200 }
  0x60   :  { %1269 = dma.done.wait [#allocation15], 2048  }
  0x61   :  { %1270 = vsyncadd [#allocation15], 4294965248  ;;  %v1283_v0 = vmov 0.0   ;;  %vm1284_vm0 = vmmov 0   ;;  %v174_v1 = vld [vmem:[#allocation7 + $0x78] sm:$0xff]  ;;  %v173_v2 = vld [vmem:[#allocation7 + $0x70] sm:$0xff] }
  0x62   :  { %850 = vmatprep.subr.mxu0 %v1283_v0  ;;  %882 = vmatprep.mubr.msk.f32.mxu0 %vm1284_vm0, %v1283_v0  ;;  %v172_v3 = vld [vmem:[#allocation7 + $0x68] sm:$0xff]  ;;  %v171_v4 = vld [vmem:[#allocation7 + $0x60] sm:$0xff]  ;;  %v170_v5 = vld [vmem:[#allocation7 + $0x58] sm:$0xff]  ;;  %s1285_s20 = smov [#allocation16]  }
  0x63   :  { %885 = vmatprep.subr.mxu1 %v1283_v0  ;;  %917 = vmatprep.mubr.msk.f32.mxu1 %vm1284_vm0, %v1283_v0  ;;  %v268_v6 = vld [vmem:[#allocation8 + $0x78] sm:$0xff]  ;;  %v267_v7 = vld [vmem:[#allocation8 + $0x70] sm:$0xff]  ;;  %v266_v9 = vld [vmem:[#allocation8 + $0x68] sm:$0xff]  ;;  %s728_s21 = sshll.u32 %s1285_s20, 4  ;;  %s729_s21 = int_to_ptr.vmem [resolvable:$true] %s728_s21 }
  0x64   :  { %851 = vmatpush3.msra.mxu0 %v174_v1  ;;  %886 = vmatpush3.msra.mxu1 %v268_v6  ;;  %v169_v8 = vld [vmem:[#allocation7 + $0x50] sm:$0xff]  ;;  %v168_v10 = vld [vmem:[#allocation7 + $0x48] sm:$0xff]  ;;  %v265_v11 = vld [vmem:[#allocation8 + $0x60] sm:$0xff]  ;;  %s1241_s22 = scalar_lea.vmem %s729_s21, 128  ;;  %p1246_p13 = scmp.lt.s32.totalorder %s729_s21, %s729_s21 }
  0x65   :  { %852 = vmatprep.subr.mxu0 %v1283_v0  ;;  %887 = vmatprep.subr.mxu1 %v1283_v0  ;;  %v167_v12 = vld [vmem:[#allocation7 + $0x40] sm:$0xff]  ;;  %v264_v13 = vld [vmem:[#allocation8 + $0x58] sm:$0xff]  ;;  %v263_v15 = vld [vmem:[#allocation8 + $0x50] sm:$0xff]  ;;  %p1242_p12 = scmp.ne.s32.totalorder %s729_s21, %s1241_s22  ;;  %p1247_p0 = scmp.lt.s32.totalorder %s1241_s22, %s1241_s22 }
  0x66   :  { %853 = vmatpush3.msra.mxu0 %v173_v2  ;;  %888 = vmatpush3.msra.mxu1 %v267_v7  ;;  %v166_v14 = vld [vmem:[#allocation7 + $0x38] sm:$0xff]  ;;  %v165_v16 = vld [vmem:[#allocation7 + $0x30] sm:$0xff]  ;;  %v262_v17 = vld [vmem:[#allocation8 + $0x48] sm:$0xff] }
  0x67   :  { %854 = vmatprep.subr.mxu0 %v1283_v0  ;;  %889 = vmatprep.subr.mxu1 %v1283_v0  ;;  %v164_v18 = vld [vmem:[#allocation7 + $0x28] sm:$0xff]  ;;  %v163_v19 = vld [vmem:[#allocation7 + $0x20] sm:$0xff]  ;;  %v162_v20 = vld [vmem:[#allocation7 + $0x18] sm:$0xff]  ;;  %p1248_p1 = por %p1247_p0, %p1246_p13 }
  0x68   :  { %855 = vmatpush3.msra.mxu0 %v172_v3  ;;  %890 = vmatpush3.msra.mxu1 %v266_v9  ;;  %v154_v21 = vld [vmem:[#allocation2] sm:$0xff]  ;;  %v153_v23 = vld [vmem:[#allocation5] sm:$0xff]  ;;  %v160_v25 = vld [vmem:[#allocation7 + $0x8] sm:$0xff] }
  0x69   :  { %856 = vmatprep.subr.mxu0 %v1283_v0  ;;  %891 = vmatprep.subr.mxu1 %v1283_v0  ;;  %v161_v22 = vld [vmem:[#allocation7 + $0x10] sm:$0xff]  ;;  %v155_v24 = vshrl.u32 %v154_v21, 8  ;;  %v159_v26 = vld [vmem:[#allocation7] sm:$0xff]  ;;  %v157_v27 = vmul.f32 1.25, %v153_v23  ;;  %v260_v29 = vld [vmem:[#allocation8 + $0x38] sm:$0xff]  ;;  %p1249_p2 = pnand %p1248_p1, %p1242_p12 }
  0x6a   :  { %857 = vmatpush3.msra.mxu0 %v171_v4  ;;  %892 = vmatpush3.msra.mxu1 %v265_v11  ;;  %v261_v28 = vld [vmem:[#allocation8 + $0x40] sm:$0xff]  ;;  %v259_v30 = vld [vmem:[#allocation8 + $0x30] sm:$0xff]  ;;  %v258_v31 = vld [vmem:[#allocation8 + $0x28] sm:$0xff] }
  0x6b   :  { %858 = vmatprep.subr.mxu0 %v1283_v0  ;;  %893 = vmatprep.subr.mxu1 %v1283_v0  ;;  %vm156_vm1 = vcmp.ge.s32.totalorder %v155_v24, 3355443  ;;  %v257_v32 = vld [vmem:[#allocation8 + $0x20] sm:$0xff]  ;;  %v256_v33 = vld [vmem:[#allocation8 + $0x18] sm:$0xff]  ;;  %v255_v34 = vld [vmem:[#allocation8 + $0x10] sm:$0xff] }
  0x6c   :  { %859 = vmatpush3.msra.mxu0 %v170_v5  ;;  %894 = vmatpush3.msra.mxu1 %v264_v13  ;;  %v254_v35 = vld [vmem:[#allocation8 + $0x8] sm:$0xff]  ;;  %v253_v36 = vld [vmem:[#allocation8] sm:$0xff]  ;;  %v362_v37 = vld [vmem:[#allocation10 + $0x78] sm:$0xff] }
  0x6d   :  { %860 = vmatprep.subr.mxu0 %v1283_v0  ;;  %895 = vmatprep.subr.mxu1 %v1283_v0  ;;  %v361_v38 = vld [vmem:[#allocation10 + $0x70] sm:$0xff]  ;;  %v360_v39 = vld [vmem:[#allocation10 + $0x68] sm:$0xff]  ;;  %v359_v40 = vld [vmem:[#allocation10 + $0x60] sm:$0xff] }
  0x6e   :  { %861 = vmatpush3.msra.mxu0 %v169_v8  ;;  %896 = vmatpush3.msra.mxu1 %v263_v15  ;;  %v358_v41 = vld [vmem:[#allocation10 + $0x58] sm:$0xff]  ;;  %v357_v42 = vld [vmem:[#allocation10 + $0x50] sm:$0xff]  ;;  %v356_v43 = vld [vmem:[#allocation10 + $0x48] sm:$0xff] }
  0x6f   :  { %862 = vmatprep.subr.mxu0 %v1283_v0  ;;  %897 = vmatprep.subr.mxu1 %v1283_v0  ;;  %v741_v44 = vld [vmem:[%s1535_s3] ss:$0 sm:$0xff]  ;;  %v355_v49 = vld [vmem:[#allocation10 + $0x40] sm:$0xff]  ;;  %v354_v50 = vld [vmem:[#allocation10 + $0x38] sm:$0xff] }
  0x70   :  { %863 = vmatpush3.msra.mxu0 %v168_v10  ;;  %898 = vmatpush3.msra.mxu1 %v262_v17  ;;  %v353_v51 = vld [vmem:[#allocation10 + $0x30] sm:$0xff]  ;;  %v352_v52 = vld [vmem:[#allocation10 + $0x28] sm:$0xff]  ;;  %v351_v53 = vld [vmem:[#allocation10 + $0x20] sm:$0xff] }
  0x71   :  { %864 = vmatprep.subr.mxu0 %v1283_v0  ;;  %899 = vmatprep.subr.mxu1 %v1283_v0  ;;  %v350_v54 = vld [vmem:[#allocation10 + $0x18] sm:$0xff]  ;;  %v349_v55 = vld [vmem:[#allocation10 + $0x10] sm:$0xff]  ;;  %v348_v56 = vld [vmem:[#allocation10 + $0x8] sm:$0xff] }
  0x72   :  { %865 = vmatpush3.msra.mxu0 %v167_v12  ;;  %900 = vmatpush3.msra.mxu1 %v261_v28  ;;  %v347_v57 = vld [vmem:[#allocation10] sm:$0xff]  ;;  %v455_v58 = vld [vmem:[#allocation11 + $0x78] sm:$0xff]  ;;  %v454_v59 = vld [vmem:[#allocation11 + $0x70] sm:$0xff] }
  0x73   :  { %866 = vmatprep.subr.mxu0 %v1283_v0  ;;  %901 = vmatprep.subr.mxu1 %v1283_v0  ;;  %v453_v60 = vld [vmem:[#allocation11 + $0x68] sm:$0xff]  ;;  %v452_v61 = vld [vmem:[#allocation11 + $0x60] sm:$0xff]  ;;  %v451_v62 = vld [vmem:[#allocation11 + $0x58] sm:$0xff] }
  0x74   :  { %867 = vmatpush3.msra.mxu0 %v166_v14  ;;  %902 = vmatpush3.msra.mxu1 %v260_v29  ;;  %v450_v63 = vld [vmem:[#allocation11 + $0x50] sm:$0xff]  ;;  %v449_v1 = vld [vmem:[#allocation11 + $0x48] sm:$0xff]  ;;  %v448_v2 = vld [vmem:[#allocation11 + $0x40] sm:$0xff] }
  0x75   :  { %868 = vmatprep.subr.mxu0 %v1283_v0  ;;  %903 = vmatprep.subr.mxu1 %v1283_v0  ;;  %v447_v3 = vld [vmem:[#allocation11 + $0x38] sm:$0xff]  ;;  %v446_v4 = vld [vmem:[#allocation11 + $0x30] sm:$0xff]  ;;  %v445_v5 = vld [vmem:[#allocation11 + $0x28] sm:$0xff] }
  0x76   :  { %869 = vmatpush3.msra.mxu0 %v165_v16  ;;  %904 = vmatpush3.msra.mxu1 %v259_v30  ;;  %v444_v6 = vld [vmem:[#allocation11 + $0x20] sm:$0xff]  ;;  %v443_v7 = vld [vmem:[#allocation11 + $0x18] sm:$0xff]  ;;  %v442_v8 = vld [vmem:[#allocation11 + $0x10] sm:$0xff] }
  0x77   :  { %870 = vmatprep.subr.mxu0 %v1283_v0  ;;  %905 = vmatprep.subr.mxu1 %v1283_v0  ;;  %v743_v9 = vld [vmem:[%s1537_s5] ss:$0 sm:$0xff]  ;;  %v441_v14 = vld [vmem:[#allocation11 + $0x8] sm:$0xff]  ;;  %v440_v15 = vld [vmem:[#allocation11] sm:$0xff] }
  0x78   :  { %871 = vmatpush3.msra.mxu0 %v164_v18  ;;  %906 = vmatpush3.msra.mxu1 %v258_v31  ;;  %v549_v16 = vld [vmem:[#allocation13 + $0x78] sm:$0xff]  ;;  %v548_v17 = vld [vmem:[#allocation13 + $0x70] sm:$0xff]  ;;  %v547_v18 = vld [vmem:[#allocation13 + $0x68] sm:$0xff] }
  0x79   :  { %872 = vmatprep.subr.mxu0 %v1283_v0  ;;  %907 = vmatprep.subr.mxu1 %v1283_v0  ;;  %v544_v21 = vld [vmem:[#allocation13 + $0x50] sm:$0xff]  ;;  %v541_v28 = vld [vmem:[#allocation13 + $0x38] sm:$0xff]  ;;  %v539_v30 = vld [vmem:[#allocation13 + $0x28] sm:$0xff] }
  0x7a   :  { %873 = vmatpush3.msra.mxu0 %v163_v19  ;;  %908 = vmatpush3.msra.mxu1 %v257_v32  ;;  %v546_v19 = vld [vmem:[#allocation13 + $0x60] sm:$0xff]  ;;  %v744_v23 = vld [vmem:[%s1539_s7] ss:$0 sm:$0xff]  ;;  %v537_v32 = vld [vmem:[#allocation13 + $0x18] sm:$0xff] }
  0x7b   :  { %874 = vmatprep.subr.mxu0 %v1283_v0  ;;  %909 = vmatprep.subr.mxu1 %v1283_v0  ;;  %v540_v29 = vld [vmem:[#allocation13 + $0x30] sm:$0xff]  ;;  %v538_v31 = vld [vmem:[#allocation13 + $0x20] sm:$0xff] }
  0x7c   :  { %875 = vmatpush3.msra.mxu0 %v162_v20  ;;  %910 = vmatpush3.msra.mxu1 %v256_v33  ;;  %v545_v20 = vld [vmem:[#allocation13 + $0x58] sm:$0xff]  ;;  %v536_v33 = vld [vmem:[#allocation13 + $0x10] sm:$0xff] }
  0x7d   :  { %876 = vmatprep.subr.mxu0 %v1283_v0  ;;  %911 = vmatprep.subr.mxu1 %v1283_v0 }
  0x7e   :  { %877 = vmatpush3.msra.mxu0 %v161_v22  ;;  %912 = vmatpush3.msra.mxu1 %v255_v34  ;;  %v543_v22 = vld [vmem:[#allocation13 + $0x48] sm:$0xff] }
  0x7f   :  { %878 = vmatprep.subr.mxu0 %v1283_v0  ;;  %913 = vmatprep.subr.mxu1 %v1283_v0  ;;  %v535_v34 = vld [vmem:[#allocation13 + $0x8] sm:$0xff] }
  0x80   :  { %879 = vmatpush3.msra.mxu0 %v160_v25  ;;  %914 = vmatpush3.msra.mxu1 %v254_v35  ;;  %v534_v35 = vld [vmem:[#allocation13] sm:$0xff] }
  0x81   :  { %880 = vmatprep.subr.mxu0 %v1283_v0  ;;  %915 = vmatprep.subr.mxu1 %v1283_v0 }
  0x82   :  { %881 = vmatpush3.msra.mxu0 %v159_v26  ;;  %916 = vmatpush3.msra.mxu1 %v253_v36  ;;  %v643_v36 = vld [vmem:[#allocation14 + $0x78] sm:$0xff] }
  0x83   :  { %883 = vmatmul.mubr.msk.f32.vlgmr.msra.gmra.mxu0 %vm156_vm1, %v157_v27  ;;  %920 = vmatprep.subr.mxu0 %v1283_v0  ;;  %v542_v27 = vld [vmem:[#allocation13 + $0x40] sm:$0xff] }
  0x84   :  { %952 = vmatprep.mubr.msk.f32.mxu0 %vm1284_vm0, %v1283_v0  ;;  %955 = vmatprep.subr.mxu1 %v1283_v0 }
  0x85   :  { %921 = vmatpush3.msra.mxu0 %v362_v37  ;;  %v642_v37 = vld [vmem:[#allocation14 + $0x70] sm:$0xff] }
  0x86   :  { %922 = vmatprep.subr.mxu0 %v1283_v0 }
  0x87   :  { %923 = vmatpush3.msra.mxu0 %v361_v38  ;;  %v641_v38 = vld [vmem:[#allocation14 + $0x68] sm:$0xff] }
  0x88   :  { %924 = vmatprep.subr.mxu0 %v1283_v0 }
  0x89   :  { %925 = vmatpush3.msra.mxu0 %v360_v39  ;;  %v640_v39 = vld [vmem:[#allocation14 + $0x60] sm:$0xff] }
  0x8a   :  { %926 = vmatprep.subr.mxu0 %v1283_v0 }
  0x8b   :  { %927 = vmatpush3.msra.mxu0 %v359_v40  ;;  %v639_v40 = vld [vmem:[#allocation14 + $0x58] sm:$0xff] }
  0x8c   :  { %928 = vmatprep.subr.mxu0 %v1283_v0 }
  0x8d   :  { %929 = vmatpush3.msra.mxu0 %v358_v41  ;;  %v638_v41 = vld [vmem:[#allocation14 + $0x50] sm:$0xff] }
  0x8e   :  { %930 = vmatprep.subr.mxu0 %v1283_v0 }
  0x8f   :  { %931 = vmatpush3.msra.mxu0 %v357_v42  ;;  %v637_v42 = vld [vmem:[#allocation14 + $0x48] sm:$0xff] }
  0x90   :  { %932 = vmatprep.subr.mxu0 %v1283_v0 }
  0x91   :  { %933 = vmatpush3.msra.mxu0 %v356_v43  ;;  %v745_v43 = vld [vmem:[%s1541_s9] ss:$0 sm:$0xff] }
  0x92   :  { %934 = vmatprep.subr.mxu0 %v1283_v0 }
  0x93   :  { %935 = vmatpush3.msra.mxu0 %v355_v49  ;;  %v635_v49 = vld [vmem:[#allocation14 + $0x38] sm:$0xff] }
  0x94   :  { %936 = vmatprep.subr.mxu0 %v1283_v0 }
  0x95   :  { %937 = vmatpush3.msra.mxu0 %v354_v50  ;;  %v634_v50 = vld [vmem:[#allocation14 + $0x30] sm:$0xff] }
  0x96   :  { %938 = vmatprep.subr.mxu0 %v1283_v0 }
  0x97   :  { %939 = vmatpush3.msra.mxu0 %v353_v51  ;;  %v633_v51 = vld [vmem:[#allocation14 + $0x28] sm:$0xff] }
  0x98   :  { %940 = vmatprep.subr.mxu0 %v1283_v0 }
  0x99   :  { %941 = vmatpush3.msra.mxu0 %v352_v52  ;;  %v632_v52 = vld [vmem:[#allocation14 + $0x20] sm:$0xff] }
  0x9a   :  { %942 = vmatprep.subr.mxu0 %v1283_v0 }
  0x9b   :  { %943 = vmatpush3.msra.mxu0 %v351_v53  ;;  %v631_v53 = vld [vmem:[#allocation14 + $0x18] sm:$0xff] }
  0x9c   :  { %944 = vmatprep.subr.mxu0 %v1283_v0 }
  0x9d   :  { %945 = vmatpush3.msra.mxu0 %v350_v54  ;;  %v630_v54 = vld [vmem:[#allocation14 + $0x10] sm:$0xff] }
  0x9e   :  { %946 = vmatprep.subr.mxu0 %v1283_v0 }
  0x9f   :  { %947 = vmatpush3.msra.mxu0 %v349_v55  ;;  %v629_v55 = vld [vmem:[#allocation14 + $0x8] sm:$0xff] }
  0xa0   :  { %948 = vmatprep.subr.mxu0 %v1283_v0 }
  0xa1   :  { %949 = vmatpush3.msra.mxu0 %v348_v56  ;;  %v628_v56 = vld [vmem:[#allocation14] sm:$0xff] }
  0xa2   :  { %950 = vmatprep.subr.mxu0 %v1283_v0 }
  0xa3   :  { %951 = vmatpush3.msra.mxu0 %v347_v57  ;;  %v746_v57 = vld [vmem:[%s1543_s11] ss:$0 sm:$0xff] }
  0xa4   :  { %990 = vmatprep.subr.mxu0 %v1283_v0 }
 0x143   :  { %v248_v45 = vpop.f32.mrf.mxu0 }
 0x144   :  { %v249_v46 = vadd.f32 %v741_v44, %v248_v45 }
 0x145   :  { %v884_v47 = vpop.f32.mrf.mxu0 }
 0x146   :  { %1073 = vtanh.f32 %v249_v46 }
 0x153   :  { %v1074_v48 = vpop.eup %1073 }
 0x154   :  { %918 = vmatmul.mubr.f32.vlgmr.msra.gmra.mxu1 %v1074_v48  ;;  %v636_v48 = vld [vmem:[#allocation14 + $0x40] sm:$0xff] }
 0x155   :  { %987 = vmatprep.mubr.msk.f32.mxu1 %vm1284_vm0, %v1283_v0  ;;  %956 = vmatpush3.msra.mxu1 %v455_v58 }
 0x156   :  { %957 = vmatprep.subr.mxu1 %v1283_v0 }
 0x157   :  { %958 = vmatpush3.msra.mxu1 %v454_v59 }
 0x158   :  { %959 = vmatprep.subr.mxu1 %v1283_v0 }
 0x159   :  { %960 = vmatpush3.msra.mxu1 %v453_v60 }
 0x15a   :  { %961 = vmatprep.subr.mxu1 %v1283_v0 }
 0x15b   :  { %962 = vmatpush3.msra.mxu1 %v452_v61 }
 0x15c   :  { %963 = vmatprep.subr.mxu1 %v1283_v0 }
 0x15d   :  { %964 = vmatpush3.msra.mxu1 %v451_v62  ;;  %v747_v62 = vld [vmem:[%s1545_s13] ss:$0 sm:$0xff] }
 0x15e   :  { %965 = vmatprep.subr.mxu1 %v1283_v0 }
 0x15f   :  { %966 = vmatpush3.msra.mxu1 %v450_v63 }
 0x160   :  { %967 = vmatprep.subr.mxu1 %v1283_v0 }
 0x161   :  { %968 = vmatpush3.msra.mxu1 %v449_v1 }
 0x162   :  { %969 = vmatprep.subr.mxu1 %v1283_v0 }
 0x163   :  { %970 = vmatpush3.msra.mxu1 %v448_v2 }
 0x164   :  { %971 = vmatprep.subr.mxu1 %v1283_v0 }
 0x165   :  { %972 = vmatpush3.msra.mxu1 %v447_v3 }
 0x166   :  { %973 = vmatprep.subr.mxu1 %v1283_v0 }
 0x167   :  { %974 = vmatpush3.msra.mxu1 %v446_v4 }
 0x168   :  { %975 = vmatprep.subr.mxu1 %v1283_v0 }
 0x169   :  { %976 = vmatpush3.msra.mxu1 %v445_v5 }
 0x16a   :  { %977 = vmatprep.subr.mxu1 %v1283_v0 }
 0x16b   :  { %978 = vmatpush3.msra.mxu1 %v444_v6 }
 0x16c   :  { %979 = vmatprep.subr.mxu1 %v1283_v0 }
 0x16d   :  { %980 = vmatpush3.msra.mxu1 %v443_v7 }
 0x16e   :  { %981 = vmatprep.subr.mxu1 %v1283_v0 }
 0x16f   :  { %982 = vmatpush3.msra.mxu1 %v442_v8 }
 0x170   :  { %983 = vmatprep.subr.mxu1 %v1283_v0 }
 0x171   :  { %984 = vmatpush3.msra.mxu1 %v441_v14 }
 0x172   :  { %985 = vmatprep.subr.mxu1 %v1283_v0 }
 0x173   :  { %986 = vmatpush3.msra.mxu1 %v440_v15 }
 0x174   :  { %1025 = vmatprep.subr.mxu1 %v1283_v0 }
 0x214   :  { %v342_v10 = vpop.f32.mrf.mxu1 }
 0x215   :  { %v343_v11 = vadd.f32 %v743_v9, %v342_v10 }
 0x216   :  { %v919_v12 = vpop.f32.mrf.mxu1 }
 0x217   :  { %1075 = vtanh.f32 %v343_v11 }
 0x224   :  { %v1076_v13 = vpop.eup %1075 }
 0x225   :  { %953 = vmatmul.mubr.f32.vlgmr.msra.gmra.mxu0 %v1076_v13 }
 0x226   :  { %1022 = vmatprep.mubr.msk.f32.mxu0 %vm1284_vm0, %v1283_v0  ;;  %991 = vmatpush3.msra.mxu0 %v549_v16 }
 0x227   :  { %992 = vmatprep.subr.mxu0 %v1283_v0 }
 0x228   :  { %993 = vmatpush3.msra.mxu0 %v548_v17 }
 0x229   :  { %994 = vmatprep.subr.mxu0 %v1283_v0 }
 0x22a   :  { %995 = vmatpush3.msra.mxu0 %v547_v18 }
 0x22b   :  { %996 = vmatprep.subr.mxu0 %v1283_v0 }
 0x22c   :  { %997 = vmatpush3.msra.mxu0 %v546_v19 }
 0x22d   :  { %998 = vmatprep.subr.mxu0 %v1283_v0 }
 0x22e   :  { %999 = vmatpush3.msra.mxu0 %v545_v20 }
 0x22f   :  { %1000 = vmatprep.subr.mxu0 %v1283_v0 }
 0x230   :  { %1001 = vmatpush3.msra.mxu0 %v544_v21 }
 0x231   :  { %1002 = vmatprep.subr.mxu0 %v1283_v0 }
 0x232   :  { %1003 = vmatpush3.msra.mxu0 %v543_v22 }
 0x233   :  { %1004 = vmatprep.subr.mxu0 %v1283_v0 }
 0x234   :  { %1005 = vmatpush3.msra.mxu0 %v542_v27 }
 0x235   :  { %1006 = vmatprep.subr.mxu0 %v1283_v0 }
 0x236   :  { %1007 = vmatpush3.msra.mxu0 %v541_v28 }
 0x237   :  { %1008 = vmatprep.subr.mxu0 %v1283_v0 }
 0x238   :  { %1009 = vmatpush3.msra.mxu0 %v540_v29 }
 0x239   :  { %1010 = vmatprep.subr.mxu0 %v1283_v0 }
 0x23a   :  { %1011 = vmatpush3.msra.mxu0 %v539_v30 }
 0x23b   :  { %1012 = vmatprep.subr.mxu0 %v1283_v0 }
 0x23c   :  { %1013 = vmatpush3.msra.mxu0 %v538_v31 }
 0x23d   :  { %1014 = vmatprep.subr.mxu0 %v1283_v0 }
 0x23e   :  { %1015 = vmatpush3.msra.mxu0 %v537_v32 }
 0x23f   :  { %1016 = vmatprep.subr.mxu0 %v1283_v0 }
 0x240   :  { %1017 = vmatpush3.msra.mxu0 %v536_v33 }
 0x241   :  { %1018 = vmatprep.subr.mxu0 %v1283_v0 }
 0x242   :  { %1019 = vmatpush3.msra.mxu0 %v535_v34 }
 0x243   :  { %1020 = vmatprep.subr.mxu0 %v1283_v0 }
 0x244   :  { %1021 = vmatpush3.msra.mxu0 %v534_v35 }
 0x2e5   :  { %v436_v24 = vpop.f32.mrf.mxu0 }
 0x2e6   :  { %v437_v25 = vadd.f32 %v744_v23, %v436_v24 }
 0x2e7   :  { %v954_v26 = vpop.f32.mrf.mxu0 }
 0x2e8   :  { %988 = vmatmul.mubr.f32.vlgmr.msra.gmra.mxu1 %v437_v25 }
 0x2e9   :  { %1057 = vmatprep.mubr.msk.f32.mxu1 %vm1284_vm0, %v1283_v0  ;;  %1026 = vmatpush3.msra.mxu1 %v643_v36 }
 0x2ea   :  { %1027 = vmatprep.subr.mxu1 %v1283_v0 }
 0x2eb   :  { %1028 = vmatpush3.msra.mxu1 %v642_v37 }
 0x2ec   :  { %1029 = vmatprep.subr.mxu1 %v1283_v0 }
 0x2ed   :  { %1030 = vmatpush3.msra.mxu1 %v641_v38 }
 0x2ee   :  { %1031 = vmatprep.subr.mxu1 %v1283_v0 }
 0x2ef   :  { %1032 = vmatpush3.msra.mxu1 %v640_v39 }
 0x2f0   :  { %1033 = vmatprep.subr.mxu1 %v1283_v0 }
 0x2f1   :  { %1034 = vmatpush3.msra.mxu1 %v639_v40 }
 0x2f2   :  { %1035 = vmatprep.subr.mxu1 %v1283_v0 }
 0x2f3   :  { %1036 = vmatpush3.msra.mxu1 %v638_v41 }
 0x2f4   :  { %1037 = vmatprep.subr.mxu1 %v1283_v0 }
 0x2f5   :  { %1038 = vmatpush3.msra.mxu1 %v637_v42 }
 0x2f6   :  { %1039 = vmatprep.subr.mxu1 %v1283_v0 }
 0x2f7   :  { %1040 = vmatpush3.msra.mxu1 %v636_v48 }
 0x2f8   :  { %1041 = vmatprep.subr.mxu1 %v1283_v0 }
 0x2f9   :  { %1042 = vmatpush3.msra.mxu1 %v635_v49 }
 0x2fa   :  { %1043 = vmatprep.subr.mxu1 %v1283_v0 }
 0x2fb   :  { %1044 = vmatpush3.msra.mxu1 %v634_v50 }
 0x2fc   :  { %1045 = vmatprep.subr.mxu1 %v1283_v0 }
 0x2fd   :  { %1046 = vmatpush3.msra.mxu1 %v633_v51 }
 0x2fe   :  { %1047 = vmatprep.subr.mxu1 %v1283_v0 }
 0x2ff   :  { %1048 = vmatpush3.msra.mxu1 %v632_v52 }
 0x300   :  { %1049 = vmatprep.subr.mxu1 %v1283_v0 }
 0x301   :  { %1050 = vmatpush3.msra.mxu1 %v631_v53 }
 0x302   :  { %1051 = vmatprep.subr.mxu1 %v1283_v0 }
 0x303   :  { %1052 = vmatpush3.msra.mxu1 %v630_v54 }
 0x304   :  { %1053 = vmatprep.subr.mxu1 %v1283_v0 }
 0x305   :  { %1054 = vmatpush3.msra.mxu1 %v629_v55 }
 0x306   :  { %1055 = vmatprep.subr.mxu1 %v1283_v0 }
 0x307   :  { %1056 = vmatpush3.msra.mxu1 %v628_v56 }
 0x3a8   :  { %v529_v44 = vpop.f32.mrf.mxu1 }
 0x3a9   :  { %v530_v45 = vadd.f32 %v745_v43, %v529_v44 }
 0x3aa   :  { %v989_v46 = vpop.f32.mrf.mxu1 }
 0x3ab   :  { %1077 = vtanh.f32 %v530_v45 }
 0x3b8   :  { %v1078_v47 = vpop.eup %1077 }
 0x3b9   :  { %1023 = vmatmul.mubr.f32.vlgmr.msra.gmra.mxu0 %v1078_v47 }
 0x479   :  { %v623_v58 = vpop.f32.mrf.mxu0 }
 0x47a   :  { %v624_v59 = vadd.f32 %v746_v57, %v623_v58 }
 0x47b   :  { %v1024_v60 = vpop.f32.mrf.mxu0 }
 0x47c   :  { %1079 = vtanh.f32 %v624_v59 }
 0x489   :  { %v1080_v61 = vpop.eup %1079 }
 0x48a   :  { %1058 = vmatmul.mubr.f32.vlgmr.msra.gmra.mxu1 %v1080_v61 }
 0x54a   :  { %v717_v63 = vpop.f32.mrf.mxu1 }
 0x54b   :  { %v718_v1 = vadd.f32 %v747_v62, %v717_v63 }
 0x54c   :  { %v1059_v0 = vpop.f32.mrf.mxu1 }
 0x54d   :  { %721 = vst [vmem:[#allocation16] sm:$0xff] %v718_v1 }
 0x54e   :  { %1252 = shalt.err (!%p1249_p2)
}
 0x54f   :  { %731 = dma.vmem_to_hbm [thread:$0]  %s729_s21, 128, %s1546_s14, [#allocation4]  }
 0x550   :  { %1271 = dma.done.wait [#allocation4], 128  }
 0x551   :  { %1272 = vsyncadd [#allocation4], 4294967168 }
 0x552   :  { %735 = vsyncpa [#allocation3], 1 }
 0x553   :  { %736 = vsyncpa [#allocation6], 1 }
 0x554   :  { %737 = vsyncpa [#allocation9], 1 }
 0x555   :  { %738 = vsyncpa [#allocation12], 1 }
 0x556   :  { %739 = vsyncpa [#allocation15], 1 }
 0x557   :  { %740 = vsyncpa [#allocation4], 1 }

</bundles_post_ra>
